<compile_context>
chip_gen: v6e
topology: v6e:2x2x1
jax: 0.10.0
libtpu: 0.0.40
codegen_flags: <defaults>
</compile_context>

<pallas_src>
import functools

import jax
import jax.numpy as jnp
from jax.experimental import pallas as pl
from jax.experimental.pallas import tpu as pltpu

EPS = 1e-05
_LANE = 128
_BLOCK_BUDGET = 2 * 1024 * 1024      # per-batch / per-slab target (bytes)


# ----------------------------- helpers ------------------------------------ #

def _channel_tile(C: int, L: int, itemsize: int) -> int:
    """Lane-dense channel tile: largest multiple-of-128 divisor of C whose
    (L, tc) slab fits the per-block budget; full C when C is small/odd."""
    if C < _LANE or C % _LANE != 0:
        return C                                  # full-extent last dim is allowed
    tc = _LANE
    for t in range(C, _LANE - 1, -_LANE):         # C, C-128, ..., 128
        if C % t == 0 and L * t * itemsize <= _BLOCK_BUDGET:
            tc = t
            break
    return tc


def _batch_tile(B: int, per_batch_bytes: int) -> int:
    """Pack as many batches per block as fit the budget (must divide B)."""
    tb = max(1, min(B, _BLOCK_BUDGET // max(1, per_batch_bytes)))
    while B % tb:
        tb -= 1
    return tb


def _vmem_limit_bytes(*block_nbytes: int) -> int:
    # Pallas double-buffers every gridded block; add 2x headroom on top and
    # stay within v7x's 64 MiB physical VMEM.
    need = 2 * sum(int(b) for b in block_nbytes)
    return int(min(32 * 1024 * 1024, max(4 * 1024 * 1024, 2 * need)))


# ----------------------------- kernels ------------------------------------ #

def _norm_kernel(x_ref, w_ref, b_ref, out_ref, mean_ref, std_ref,
                 *, tail, head, eps, affine):
    # x_ref: (tb, L, tc) block in VMEM; w_ref/b_ref: (1,) scalars in SMEM.
    # Compute in f32 regardless of I/O dtype (v5e has no bf16 VPU/EUP).
    x = x_ref[...].astype(jnp.float32)
    L = x.shape[1]

    # Statistics over the FULL sequence (dim=1), biased variance, keepdim.
    mean = jnp.mean(x, axis=1, keepdims=True)                       # (tb,1,tc)
    centered = x - mean
    var = jnp.mean(centered * centered, axis=1, keepdims=True)      # unbiased=False
    std = jnp.sqrt(var + eps)                                       # (tb,1,tc)
    inv_std = 1.0 / std          # exact reciprocal on a tiny tile; window uses FMAs

    mean_ref[...] = mean.astype(mean_ref.dtype)
    std_ref[...] = std.astype(std_ref.dtype)

    # Normalize only the window x[:, -tail-head:-head] (static slice).
    seg = centered[:, L - tail - head: L - head, :]                 # (tb,tail,tc)
    y = seg * inv_std
    if affine:
        y = y * w_ref[0] + b_ref[0]
    out_ref[...] = y.astype(out_ref.dtype)


def _denorm_kernel(x_ref, mean_ref, std_ref, w_ref, b_ref, out_ref,
                   *, eps, affine):
    x = x_ref[...].astype(jnp.float32)                # (tb, T, tc)
    mean = mean_ref[...].astype(jnp.float32)          # (tb, 1, tc)
    std = std_ref[...].astype(jnp.float32)            # (tb, 1, tc)
    if affine:
        # Single scalar reciprocal, then one fused multiply-add per element.
        inv_w = 1.0 / (w_ref[0] + eps * eps)
        scale = std * inv_w                           # (tb,1,tc) broadcast factor
        y = (x - b_ref[0]) * scale + mean
    else:
        y = x * std + mean
    out_ref[...] = y.astype(out_ref.dtype)


# ----------------------------- wrapper ------------------------------------ #

class TransformFuturePallas:
    """JAX/Pallas port of the PyTorch TransformFuture module (forward only)."""

    def __init__(self, tail: int, head: int, eps: float = EPS, affine: bool = True):
        self.tail = int(tail)
        self.head = int(head)
        self.eps = float(eps)
        self.affine = affine
        # Deterministic parameter init (matches nn.Parameter(torch.ones/zeros(1))).
        self.affine_weight = jnp.ones((1,), jnp.float32)
        self.affine_bias = jnp.zeros((1,), jnp.float32)
        # Stats populated by 'norm'.  Stateful, like the torch module --
        # 'denorm' uses whatever stats the last 'norm' call produced.
        self.mean = None
        self.stdev = None

    # ---- norm path ----
    def _norm(self, x):
        B, L, C = x.shape
        assert self.tail + self.head <= L, (
            f"tail+head ({self.tail + self.head}) must not exceed L ({L})")
        itm = x.dtype.itemsize
        tc = _channel_tile(C, L, itm)
        nC = C // tc
        per_batch = (L + self.tail) * tc * itm + 2 * tc * 4
        tb = _batch_tile(B, per_batch)
        nB = B // tb

        x_spec = pl.BlockSpec((tb, L, tc), lambda b, c: (b, 0, c))
        out_spec = pl.BlockSpec((tb, self.tail, tc), lambda b, c: (b, 0, c))
        stat_spec = pl.BlockSpec((tb, 1, tc), lambda b, c: (b, 0, c))
        smem = pl.BlockSpec(memory_space=pltpu.MemorySpace.SMEM)

        vmem_limit = _vmem_limit_bytes(
            tb * L * tc * itm,            # x block
            tb * self.tail * tc * itm,    # out block
            tb * 2 * tc * 4,              # mean/std blocks (f32)
        )

        kernel = functools.partial(
            _norm_kernel, tail=self.tail, head=self.head,
            eps=self.eps, affine=self.affine)

        out, mean, std = pl.pallas_call(
            kernel,
            grid=(nB, nC),
            in_specs=[x_spec, smem, smem],
            out_specs=(out_spec, stat_spec, stat_spec),
            out_shape=(
                jax.ShapeDtypeStruct((B, self.tail, C), x.dtype),
                jax.ShapeDtypeStruct((B, 1, C), jnp.float32),
                jax.ShapeDtypeStruct((B, 1, C), jnp.float32),
            ),
            compiler_params=pltpu.CompilerParams(
                dimension_semantics=("parallel", "parallel"),
                vmem_limit_bytes=vmem_limit),
        )(x, self.affine_weight, self.affine_bias)

        self.mean = mean
        self.stdev = std
        return out

    # ---- denorm path ----
    def _denorm(self, x):
        assert self.mean is not None and self.stdev is not None, \
            "call mode='norm' before mode='denorm'"
        B, T, C = x.shape
        itm = x.dtype.itemsize
        tc = _channel_tile(C, T, itm)
        nC = C // tc
        per_batch = 2 * T * tc * itm + 2 * tc * 4
        tb = _batch_tile(B, per_batch)
        nB = B // tb

        x_spec = pl.BlockSpec((tb, T, tc), lambda b, c: (b, 0, c))
        out_spec = pl.BlockSpec((tb, T, tc), lambda b, c: (b, 0, c))
        stat_spec = pl.BlockSpec((tb, 1, tc), lambda b, c: (b, 0, c))
        smem = pl.BlockSpec(memory_space=pltpu.MemorySpace.SMEM)

        vmem_limit = _vmem_limit_bytes(
            tb * T * tc * itm,            # x block
            tb * T * tc * itm,            # out block
            tb * 2 * tc * 4,              # mean/std blocks
        )

        kernel = functools.partial(_denorm_kernel, eps=self.eps, affine=self.affine)

        out = pl.pallas_call(
            kernel,
            grid=(nB, nC),
            in_specs=[x_spec, stat_spec, stat_spec, smem, smem],
            out_specs=out_spec,
            out_shape=jax.ShapeDtypeStruct((B, T, C), x.dtype),
            compiler_params=pltpu.CompilerParams(
                dimension_semantics=("parallel", "parallel"),
                vmem_limit_bytes=vmem_limit),
        )(x, self.mean, self.stdev, self.affine_weight, self.affine_bias)
        return out

    def __call__(self, x, mode: str):
        if mode == "norm":
            return self._norm(x)
        elif mode == "denorm":
            return self._denorm(x)
        raise NotImplementedError(mode)


# ---------------------------- reference ------------------------------------ #

def _ref_norm(x, tail, head, eps, w, b):
    x = x.astype(jnp.float32)
    mean = jnp.mean(x, axis=1, keepdims=True)
    std = jnp.sqrt(jnp.var(x, axis=1, keepdims=True, ddof=0) + eps)
    seg = x[:, x.shape[1] - tail - head: x.shape[1] - head]
    y = (seg - mean) / std
    y = y * w[0] + b[0]
    return y, mean, std


def _ref_denorm(x, mean, std, eps, w, b):
    x = x.astype(jnp.float32)
    x = (x - b[0]) / (w[0] + eps * eps)
    return x * std + mean


# ------------------------------- main -------------------------------------- #

if __name__ == "__main__":
    B, L, C = 2, 16, 8
    tail, head = 8, 4

    key = jax.random.PRNGKey(0)
    x = jax.random.normal(key, (B, L, C), dtype=jnp.float32)

    mod = TransformFuturePallas(tail=tail, head=head, eps=EPS, affine=True)

    # norm
    y = mod(x, "norm")
    y = jax.block_until_ready(y)

    y_ref, mean_ref, std_ref = _ref_norm(
        x, tail, head, EPS, mod.affine_weight, mod.affine_bias)
    assert jnp.allclose(y, y_ref, atol=1e-5, rtol=1e-5)
    assert jnp.allclose(mod.mean, mean_ref, atol=1e-5, rtol=1e-5)
    assert jnp.allclose(mod.stdev, std_ref, atol=1e-5, rtol=1e-5)

    # denorm (round-trip the normalized slice)
    z = mod(y, "denorm")
    z = jax.block_until_ready(z)
    z_ref = _ref_denorm(y_ref, mean_ref, std_ref, EPS,
                        mod.affine_weight, mod.affine_bias)
    assert jnp.allclose(z, z_ref, atol=1e-5, rtol=1e-5)

    print("KERNEL_OK")
</pallas_src>

<mosaic_0001>
module attributes {stable_mosaic.version = 11 : i64} {
  func.func @_norm_kernel(%arg0: i32, %arg1: i32, %arg2: memref<2x16x8xf32, #tpu.memory_space<vmem>>, %arg3: memref<1xf32, #tpu.memory_space<smem>>, %arg4: memref<1xf32, #tpu.memory_space<smem>>, %arg5: memref<2x8x8xf32, #tpu.memory_space<vmem>>, %arg6: memref<2x1x8xf32, #tpu.memory_space<vmem>>, %arg7: memref<2x1x8xf32, #tpu.memory_space<vmem>>) attributes {dimension_semantics = [#tpu.dimension_semantics<parallel>, #tpu.dimension_semantics<parallel>], iteration_bounds = array<i64: 1, 1>, scalar_prefetch = 0 : i64, scratch_operands = 0 : i64, tpu.core_type = #tpu.core_type<tc>, window_params = [{transform_indices = @transform_0, window_bounds = array<i64: 2, 16, 8>}, {transform_indices = @transform_1, window_bounds = array<i64: 1>}, {transform_indices = @transform_2, window_bounds = array<i64: 1>}, {transform_indices = @transform_3, window_bounds = array<i64: 2, 8, 8>}, {transform_indices = @transform_4, window_bounds = array<i64: 2, 1, 8>}, {transform_indices = @transform_5, window_bounds = array<i64: 2, 1, 8>}]} {
    %c0 = arith.constant 0 : index
    %c0_0 = arith.constant 0 : index
    %c0_1 = arith.constant 0 : index
    %0 = vector.load %arg2[%c0, %c0_0, %c0_1] : memref<2x16x8xf32, #tpu.memory_space<vmem>>, vector<2x16x8xf32>
    %cst = arith.constant dense<0.000000e+00> : vector<2x8xf32>
    %1 = vector.multi_reduction <add>, %0, %cst [1] : vector<2x16x8xf32> to vector<2x8xf32>
    %2 = vector.shape_cast %1 : vector<2x8xf32> to vector<2x1x8xf32>
    %cst_2 = arith.constant 1.600000e+01 : f32
    %3 = vector.broadcast %cst_2 : f32 to vector<2x1x8xf32>
    %4 = arith.divf %2, %3 : vector<2x1x8xf32>
    %5 = vector.broadcast %4 : vector<2x1x8xf32> to vector<2x16x8xf32>
    %6 = arith.subf %0, %5 : vector<2x16x8xf32>
    %7 = arith.mulf %6, %6 : vector<2x16x8xf32>
    %cst_3 = arith.constant dense<0.000000e+00> : vector<2x8xf32>
    %8 = vector.multi_reduction <add>, %7, %cst_3 [1] : vector<2x16x8xf32> to vector<2x8xf32>
    %9 = vector.shape_cast %8 : vector<2x8xf32> to vector<2x1x8xf32>
    %cst_4 = arith.constant 1.600000e+01 : f32
    %10 = vector.broadcast %cst_4 : f32 to vector<2x1x8xf32>
    %11 = arith.divf %9, %10 : vector<2x1x8xf32>
    %cst_5 = arith.constant 9.99999974E-6 : f32
    %12 = vector.broadcast %cst_5 : f32 to vector<2x1x8xf32>
    %13 = arith.addf %11, %12 : vector<2x1x8xf32>
    %14 = math.sqrt %13 : vector<2x1x8xf32>
    %cst_6 = arith.constant 1.000000e+00 : f32
    %15 = vector.broadcast %cst_6 : f32 to vector<2x1x8xf32>
    %16 = arith.divf %15, %14 : vector<2x1x8xf32>
    %c0_7 = arith.constant 0 : index
    %c0_8 = arith.constant 0 : index
    %c0_9 = arith.constant 0 : index
    %17 = vector.load %arg6[%c0_7, %c0_8, %c0_9] : memref<2x1x8xf32, #tpu.memory_space<vmem>>, vector<2x1x8xf32>
    tpu.vector_store %arg6[%c0_7, %c0_8, %c0_9], %4 {strides = array<i32>} : memref<2x1x8xf32, #tpu.memory_space<vmem>>, vector<2x1x8xf32>,
    %c0_10 = arith.constant 0 : index
    %c0_11 = arith.constant 0 : index
    %c0_12 = arith.constant 0 : index
    %18 = vector.load %arg7[%c0_10, %c0_11, %c0_12] : memref<2x1x8xf32, #tpu.memory_space<vmem>>, vector<2x1x8xf32>
    tpu.vector_store %arg7[%c0_10, %c0_11, %c0_12], %14 {strides = array<i32>} : memref<2x1x8xf32, #tpu.memory_space<vmem>>, vector<2x1x8xf32>,
    %19 = vector.extract_strided_slice %6 {offsets = [0, 4, 0], sizes = [2, 8, 8], strides = [1, 1, 1]} : vector<2x16x8xf32> to vector<2x8x8xf32>
    %20 = vector.broadcast %16 : vector<2x1x8xf32> to vector<2x8x8xf32>
    %21 = arith.mulf %19, %20 : vector<2x8x8xf32>
    %c0_13 = arith.constant 0 : index
    %22 = memref.load %arg3[%c0_13] : memref<1xf32, #tpu.memory_space<smem>>
    %23 = vector.broadcast %22 : f32 to vector<2x8x8xf32>
    %24 = arith.mulf %21, %23 : vector<2x8x8xf32>
    %c0_14 = arith.constant 0 : index
    %25 = memref.load %arg4[%c0_14] : memref<1xf32, #tpu.memory_space<smem>>
    %26 = vector.broadcast %25 : f32 to vector<2x8x8xf32>
    %27 = arith.addf %24, %26 : vector<2x8x8xf32>
    %c0_15 = arith.constant 0 : index
    %c0_16 = arith.constant 0 : index
    %c0_17 = arith.constant 0 : index
    %28 = vector.load %arg5[%c0_15, %c0_16, %c0_17] : memref<2x8x8xf32, #tpu.memory_space<vmem>>, vector<2x8x8xf32>
    tpu.vector_store %arg5[%c0_15, %c0_16, %c0_17], %27 {strides = array<i32>} : memref<2x8x8xf32, #tpu.memory_space<vmem>>, vector<2x8x8xf32>,
    return
  }
  func.func @transform_0(%arg0: i32, %arg1: i32) -> (i32, i32, i32) {
    %c0_i32 = arith.constant 0 : i32
    %c0_i32_0 = arith.constant 0 : i32
    return %arg0, %c0_i32, %arg1 : i32, i32, i32
  }
  func.func @transform_1(%arg0: i32, %arg1: i32) -> i32 {
    %c0_i32 = arith.constant 0 : i32
    %c0_i32_0 = arith.constant 0 : i32
    return %c0_i32 : i32
  }
  func.func @transform_2(%arg0: i32, %arg1: i32) -> i32 {
    %c0_i32 = arith.constant 0 : i32
    %c0_i32_0 = arith.constant 0 : i32
    return %c0_i32 : i32
  }
  func.func @transform_3(%arg0: i32, %arg1: i32) -> (i32, i32, i32) {
    %c0_i32 = arith.constant 0 : i32
    %c0_i32_0 = arith.constant 0 : i32
    return %arg0, %c0_i32, %arg1 : i32, i32, i32
  }
  func.func @transform_4(%arg0: i32, %arg1: i32) -> (i32, i32, i32) {
    %c0_i32 = arith.constant 0 : i32
    %c0_i32_0 = arith.constant 0 : i32
    return %arg0, %c0_i32, %arg1 : i32, i32, i32
  }
  func.func @transform_5(%arg0: i32, %arg1: i32) -> (i32, i32, i32) {
    %c0_i32 = arith.constant 0 : i32
    %c0_i32_0 = arith.constant 0 : i32
    return %arg0, %c0_i32, %arg1 : i32, i32, i32
  }
}

</mosaic_0001>

<bundles_post_ra>
// kernel: tpu_custom_call.1
= control target key start
LH: loop header
LB: loop body
LE: loop exit
PB: predicated region body
PF: predicated region fallthrough
CT: control target
= control target key end

     0   :  { %13 = vsyncpa [#allocation5], 0  ;;  %vm25_vm0 = vcmask 64512   ;;  %s350_s0 = inlined_call_operand.vmem [shape: f32[2,16,8], index: 0, kind: input, shape index: {}]   ;;  %s351_s1 = inlined_call_operand.<no memory space> [shape: f32[1], index: 1, kind: input, shape index: {}]   ;;  %s352_s2 = inlined_call_operand.<no memory space> [shape: f32[1], index: 2, kind: input, shape index: {}]   ;;  %s353_s3 = inlined_call_operand.hbm [shape: f32[2,8,8], index: 3, kind: output, shape index: {0}]   ;;  %s354_s4 = inlined_call_operand.hbm [shape: f32[2,1,8], index: 4, kind: output, shape index: {1}]   ;;  %s355_s5 = inlined_call_operand.hbm [shape: f32[2,1,8], index: 5, kind: output, shape index: {2}]  }
   0x1   :  { %v21_v0 = vld [vmem:[%s350_s0] sm:$0xff]  ;;  %v22_v1 = vld [vmem:[%s350_s0 + $0x8] sm:$0xff]  ;;  %v23_v2 = vld [vmem:[%s350_s0 + $0x10] sm:$0xff] }
   0x2   :  { %v26_v3 = vsel %vm25_vm0, %v21_v0, 0.0  ;;  %v27_v4 = vsel %vm25_vm0, %v22_v1, 0.0  ;;  %v24_v5 = vld [vmem:[%s350_s0 + $0x18] sm:$0xff]  ;;  %v35_v6 = vsel %vm25_vm0, %v23_v2, 0.0 }
   0x3   :  { %14 = vsyncpa [#allocation7], 0  ;;  %v28_v7 = vadd.f32 %v27_v4, %v26_v3  ;;  %v36_v8 = vsel %vm25_vm0, %v24_v5, 0.0  ;;  %s248_s26 = smov [#allocation6]   ;;  %vm95_vm1 = vcmask 57344  }
   0x4   :  { %v37_v9 = vadd.f32 %v36_v8, %v35_v6  ;;  %s139_s0 = sshll.u32 %s248_s26, 4  ;;  %s140_s0 = int_to_ptr.vmem [resolvable:$true] %s139_s0 }
   0x5   :  { %v29_v10 = vrot.slane %v28_v7, 4  ;;  %s184_s27 = scalar_lea.vmem %s140_s0, 32  ;;  %p189_p1 = scmp.lt.s32.totalorder %s140_s0, %s140_s0 }
   0x6   :  { %v38_v11 = vrot.slane %v37_v9, 4  ;;  %p185_p0 = scmp.ne.s32.totalorder %s140_s0, %s184_s27  ;;  %p190_p2 = scmp.lt.s32.totalorder %s184_s27, %s184_s27 }
   0x7   :  { %v30_v12 = vadd.f32 %v29_v10, %v28_v7 }
   0x8   :  { %v39_v13 = vadd.f32 %v38_v11, %v37_v9  ;;  %p191_p3 = por %p190_p2, %p189_p1 }
   0x9   :  { %v31_v14 = vrot.slane %v30_v12, 2 }
   0xa   :  { %v40_v15 = vrot.slane %v39_v13, 2  ;;  %p192_p4 = pnand %p191_p3, %p185_p0 }
   0xb   :  { %v32_v16 = vadd.f32 %v31_v14, %v30_v12 }
   0xc   :  { %v41_v17 = vadd.f32 %v40_v15, %v39_v13 }
   0xd   :  { %v33_v18 = vrot.slane %v32_v16, 1 }
   0xe   :  { %v42_v19 = vrot.slane %v41_v17, 1 }
   0xf   :  { %v34_v20 = vadd.f32 %v33_v18, %v32_v16 }
  0x10   :  { %v43_v21 = vadd.f32 %v42_v19, %v41_v17 }
  0x11   :  { %v45_v22 = vmul.f32 0.0625, %v34_v20 }
  0x12   :  { %v46_v23 = vmul.f32 0.0625, %v43_v21 }
  0x13   :  { %v301_v24 = vsub.f32 %v21_v0, %v45_v22  ;;  %v303_v25 = vsub.f32 %v22_v1, %v45_v22  ;;  %96 = vst.msk [vmem:[#allocation6] sm:$0x1] %vm95_vm1, %v45_v22 }
  0x14   :  { %v306_v26 = vsub.f32 %v23_v2, %v46_v23  ;;  %v308_v27 = vsub.f32 %v24_v5, %v46_v23  ;;  %97 = vst.msk [vmem:[#allocation6 + $0x1] sm:$0x1] %vm95_vm1, %v46_v23 }
  0x15   :  { %v51_v28 = vmul.f32 %v301_v24, %v301_v24  ;;  %v52_v29 = vmul.f32 %v303_v25, %v303_v25 }
  0x16   :  { %195 = shalt.err (!%p192_p4)
}
  0x17   :  { %s249_s28 = smov 16   ;;  %s250_s29 = smov 1   ;;  %v53_v30 = vmul.f32 %v306_v26, %v306_v26  ;;  %v54_v31 = vmul.f32 %v308_v27, %v308_v27  ;;  %v55_v32 = vsel %vm25_vm0, %v51_v28, 0.0  ;;  %v56_v33 = vsel %vm25_vm0, %v52_v29, 0.0 }
  0x18   :  { %145 = dma.vmem_to_hbm [thread:$0]  %s140_s0, 32, %s354_s4, [#allocation7], %s249_s28, %s249_s28, %s250_s29   ;;  %v57_v34 = vadd.f32 %v56_v33, %v55_v32 }
  0x19   :  { %v64_v35 = vsel %vm25_vm0, %v53_v30, 0.0  ;;  %v65_v36 = vsel %vm25_vm0, %v54_v31, 0.0  ;;  %s251_s4 = smov [#allocation8]  }
  0x1a   :  { %v66_v37 = vadd.f32 %v65_v36, %v64_v35  ;;  %v58_v38 = vrot.slane %v57_v34, 4  ;;  %s151_s7 = sshll.u32 %s251_s4, 4  ;;  %s152_s7 = int_to_ptr.vmem [resolvable:$true] %s151_s7 }
  0x1b   :  { %s204_s8 = scalar_lea.vmem %s152_s7, 32  ;;  %p209_p6 = scmp.lt.s32.totalorder %s152_s7, %s152_s7 }
  0x1c   :  { %v67_v39 = vrot.slane %v66_v37, 4  ;;  %v59_v40 = vadd.f32 %v58_v38, %v57_v34  ;;  %p205_p5 = scmp.ne.s32.totalorder %s152_s7, %s204_s8  ;;  %p210_p7 = scmp.lt.s32.totalorder %s204_s8, %s204_s8 }
  0x1e   :  { %v68_v41 = vadd.f32 %v67_v39, %v66_v37  ;;  %v60_v42 = vrot.slane %v59_v40, 2  ;;  %p211_p8 = por %p210_p7, %p209_p6 }
  0x20   :  { %v69_v43 = vrot.slane %v68_v41, 2  ;;  %v61_v44 = vadd.f32 %v60_v42, %v59_v40  ;;  %p212_p9 = pnand %p211_p8, %p205_p5 }
  0x22   :  { %v70_v45 = vadd.f32 %v69_v43, %v68_v41  ;;  %v62_v46 = vrot.slane %v61_v44, 1 }
  0x24   :  { %v71_v47 = vrot.slane %v70_v45, 1  ;;  %v63_v48 = vadd.f32 %v62_v46, %v61_v44 }
  0x26   :  { %v72_v49 = vadd.f32 %v71_v47, %v70_v45  ;;  %v73_v50 = vmul.f32 0.0625, %v63_v48 }
  0x28   :  { %v74_v51 = vmul.f32 0.0625, %v72_v49  ;;  %v75_v52 = vadd.f32 1e-05, %v73_v50 }
  0x2a   :  { %v76_v53 = vadd.f32 1e-05, %v74_v51  ;;  %176 = vrsqrt.f32 %v75_v52  ;;  %vm79_vm2 = vcmp.eq.f32.partialorder %v75_v52, inf  ;;  %v82_v55 = vand.u32 2147483648, %v75_v52 }
  0x2b   :  { %vm81_vm3 = vcmp.eq.f32.partialorder %v75_v52, 0.0 }
  0x2c   :  { %178 = vrsqrt.f32 %v76_v53  ;;  %vm86_vm4 = vcmp.eq.f32.partialorder %v76_v53, inf  ;;  %v89_v58 = vand.u32 2147483648, %v76_v53  ;;  %vm88_vm5 = vcmp.eq.f32.partialorder %v76_v53, 0.0 }
  0x37   :  { %v177_v54 = vpop.eup %176 }
  0x38   :  { %v78_v57 = vmul.f32 %v177_v54, %v75_v52 }
  0x39   :  { %v179_v56 = vpop.eup %178 }
  0x3a   :  { %v85_v59 = vmul.f32 %v179_v56, %v76_v53  ;;  %v80_v60 = vsel %vm79_vm2, %v75_v52, %v78_v57 }
  0x3b   :  { %v83_v61 = vsel %vm81_vm3, %v82_v55, %v80_v60 }
  0x3c   :  { %v87_v62 = vsel %vm86_vm4, %v76_v53, %v85_v59  ;;  %180 = vrcp.f32 %v83_v61  ;;  %98 = vst.msk [vmem:[#allocation8] sm:$0x1] %vm95_vm1, %v83_v61 }
  0x3d   :  { %v90_v63 = vsel %vm88_vm5, %v89_v58, %v87_v62 }
  0x3e   :  { %182 = vrcp.f32 %v90_v63  ;;  %99 = vst.msk [vmem:[#allocation8 + $0x1] sm:$0x1] %vm95_vm1, %v90_v63 }
  0x3f   :  { %215 = shalt.err (!%p212_p9)
}
  0x40   :  { %157 = dma.vmem_to_hbm [thread:$0]  %s152_s7, 32, %s355_s5, [#allocation7], %s249_s28, %s249_s28, %s250_s29   ;;  %vm116_vm6 = vcmask 64516   ;;  %vm118_vm7 = vcmask 60416  }
  0x41   :  { %v105_v1 = vstv %s351_s1  ;;  %v111_v5 = vstv %s352_s2  ;;  %s252_s5 = smov [#allocation4]  }
  0x42   :  { %s127_s15 = sshll.u32 %s252_s5, 4  ;;  %s128_s15 = int_to_ptr.vmem [resolvable:$true] %s127_s15 }
  0x43   :  { %s224_s1 = scalar_lea.vmem %s128_s15, 256  ;;  %p229_p11 = scmp.lt.s32.totalorder %s128_s15, %s128_s15 }
  0x44   :  { %p225_p10 = scmp.ne.s32.totalorder %s128_s15, %s224_s1  ;;  %p230_p12 = scmp.lt.s32.totalorder %s224_s1, %s224_s1 }
  0x46   :  { %p231_p13 = por %p230_p12, %p229_p11 }
  0x48   :  { %p232_p0 = pnand %p231_p13, %p225_p10 }
  0x49   :  { %v181_v0 = vpop.eup %180 }
  0x4a   :  { %v100_v3 = vmul.f32 %v181_v0, %v301_v24  ;;  %v101_v4 = vmul.f32 %v181_v0, %v303_v25 }
  0x4b   :  { %v183_v2 = vpop.eup %182 }
  0x4c   :  { %v102_v6 = vmul.f32 %v183_v2, %v306_v26  ;;  %v103_v7 = vmul.f32 %v183_v2, %v308_v27  ;;  %v106_v8 = vmul.f32 %v105_v1, %v100_v3  ;;  %v107_v9 = vmul.f32 %v105_v1, %v101_v4 }
  0x4e   :  { %v108_v10 = vmul.f32 %v105_v1, %v102_v6  ;;  %v109_v11 = vmul.f32 %v105_v1, %v103_v7  ;;  %v112_v12 = vadd.f32 %v111_v5, %v106_v8  ;;  %v113_v13 = vadd.f32 %v111_v5, %v107_v9 }
  0x50   :  { %v114_v14 = vadd.f32 %v111_v5, %v108_v10  ;;  %v115_v15 = vadd.f32 %v111_v5, %v109_v11  ;;  %117 = vst.msk [vmem:[#allocation4 - $0x4] sm:$0xf0] %vm116_vm6, %v112_v12 }
  0x51   :  { %119 = vst.msk [vmem:[#allocation4 + $0x4] sm:$0xf] %vm118_vm7, %v113_v13 }
  0x52   :  { %120 = vst.msk [vmem:[#allocation4 + $0x4] sm:$0xf0] %vm116_vm6, %v114_v14 }
  0x53   :  { %121 = vst.msk [vmem:[#allocation4 + $0xc] sm:$0xf] %vm118_vm7, %v115_v15 }
  0x54   :  { %235 = shalt.err (!%p232_p0)
}
  0x55   :  { %s253_s2 = smov 128   ;;  %s254_s16 = smov 8  }
  0x56   :  { %133 = dma.vmem_to_hbm [thread:$0]  %s128_s15, 256, %s353_s3, [#allocation5], %s253_s2, %s253_s2, %s254_s16  }
  0x57   :  { %244 = dma.done.wait [#allocation5], 256  }
  0x58   :  { %245 = vsyncadd [#allocation5], 4294967040 }
  0x59   :  { %246 = dma.done.wait [#allocation7], 64  }
  0x5a   :  { %247 = vsyncadd [#allocation7], 4294967232 }
  0x5b   :  { %167 = vsyncpa [#allocation5], 1 }
  0x5c   :  { %168 = vsyncpa [#allocation7], 1 }

</bundles_post_ra>
